<compile_context>
chip_gen: v5e
topology: v5e:2x2
jax: 0.10.0
libtpu: 0.0.40
codegen_flags: <defaults>
</compile_context>

<pallas_src>
import functools

import jax
import jax.numpy as jnp
from jax.experimental import pallas as pl
from jax.experimental.pallas import tpu as pltpu


def _round_up(x, m):
    return ((x + m - 1) // m) * m


def mlp_kernel(x_ref, w1_ref, b1_ref, w2_ref, b2_ref, o_ref):
    # Layer 1: Linear(in_dims -> inner_pad) on the MXU, f32 accumulation.
    h = jnp.dot(x_ref[...], w1_ref[...], preferred_element_type=jnp.float32)
    h = jnp.maximum(h + b1_ref[...], 0.0)          # bias + ReLU on the VPU (f32)
    # Dropout: identity at inference time.
    # Layer 2: Linear(inner_pad -> 1). N=1 matmul is degenerate on the MXU, so
    # use a VPU multiply + lane reduction instead, plus the SMEM scalar bias.
    o = jnp.sum(h * w2_ref[...], axis=-1, keepdims=True) + b2_ref[0, 0]
    o_ref[...] = o.astype(o_ref.dtype)


@functools.partial(jax.jit, static_argnames=("tile_b",))
def mlp_forward(x, w1, b1, w2, b2, *, tile_b=4096):
    """x: [B, in_dims] f32; w1: [in_dims, inner]; b1: [inner]; w2: [inner, 1]; b2: [1]."""
    B, in_dims = x.shape
    inner = w1.shape[1]
    inner_pad = max(128, _round_up(inner, 128))    # lane-dense hidden width

    # --- Pad the hidden dimension (zeros => exact, padded cols contribute 0) ---
    w1_p = jnp.zeros((in_dims, inner_pad), jnp.bfloat16).at[:, :inner].set(
        w1.astype(jnp.bfloat16))
    b1_p = jnp.zeros((1, inner_pad), jnp.float32).at[0, :inner].set(
        b1.reshape(-1).astype(jnp.float32))
    w2_p = jnp.zeros((1, inner_pad), jnp.float32).at[0, :inner].set(
        w2.reshape(-1).astype(jnp.float32))
    b2_p = b2.reshape(1, 1).astype(jnp.float32)    # scalar, lives in SMEM

    # --- Batch tiling: big double-buffered tiles; pad B to a tile multiple ---
    tb = min(tile_b, _round_up(B, 8))
    tb = _round_up(tb, 8)
    b_pad = _round_up(B, tb)
    x_p = x.astype(jnp.bfloat16)
    if b_pad != B:
        x_p = jnp.pad(x_p, ((0, b_pad - B), (0, 0)))
    grid = (b_pad // tb,)

    cost = pl.CostEstimate(
        flops=2 * b_pad * in_dims * inner_pad + 2 * b_pad * inner_pad,
        transcendentals=0,
        bytes_accessed=(b_pad * in_dims * 2 + b_pad * 4
                        + in_dims * inner_pad * 2 + 2 * inner_pad * 4 + 4),
    )

    out = pl.pallas_call(
        mlp_kernel,
        out_shape=jax.ShapeDtypeStruct((b_pad, 1), jnp.float32),
        grid_spec=pltpu.PrefetchScalarGridSpec(
            num_scalar_prefetch=0,
            grid=grid,
            in_specs=[
                pl.BlockSpec((tb, in_dims), lambda i: (i, 0)),        # x: pipelined
                pl.BlockSpec((in_dims, inner_pad), lambda i: (0, 0)), # W1: resident
                pl.BlockSpec((1, inner_pad), lambda i: (0, 0)),       # b1: resident
                pl.BlockSpec((1, inner_pad), lambda i: (0, 0)),       # W2 row: resident
                pl.BlockSpec(memory_space=pltpu.MemorySpace.SMEM),    # b2 scalar
            ],
            out_specs=pl.BlockSpec((tb, 1), lambda i: (i, 0)),
        ),
        compiler_params=pltpu.CompilerParams(
            dimension_semantics=("parallel",),
        ),
        cost_estimate=cost,
    )(x_p, w1_p, b1_p, w2_p, b2_p)

    return out[:B]


def xavier_uniform(key, fan_in, fan_out, dtype=jnp.float32):
    # Matches torch.nn.init.xavier_uniform_ (gain=1): U(-a, a), a = sqrt(6/(fan_in+fan_out))
    a = (6.0 / (fan_in + fan_out)) ** 0.5
    return jax.random.uniform(key, (fan_in, fan_out), dtype=dtype, minval=-a, maxval=a)


def init_params(key, in_dims=256, inner_dim=64):
    k1, k2 = jax.random.split(key)
    w1 = xavier_uniform(k1, in_dims, inner_dim)           # Linear(in_dims, inner_dim).weight^T
    b1 = jnp.full((inner_dim,), 0.01, dtype=jnp.float32)
    w2 = xavier_uniform(k2, inner_dim, 1)                 # Linear(inner_dim, 1).weight^T
    b2 = jnp.full((1,), 0.01, dtype=jnp.float32)
    return w1, b1, w2, b2


if __name__ == "__main__":
    key = jax.random.PRNGKey(0)
    k_x, k_p = jax.random.split(key)

    B, IN_DIMS, INNER = 8, 256, 64
    x = jax.random.normal(k_x, (B, IN_DIMS), dtype=jnp.float32)
    w1, b1, w2, b2 = init_params(k_p, in_dims=IN_DIMS, inner_dim=INNER)

    out = mlp_forward(x, w1, b1, w2, b2)
    out = jax.block_until_ready(out)
    assert out.shape == (B, 1)

    # Reference matched to kernel precision (bf16 inputs, f32 accumulation).
    h_ref = jnp.maximum(
        jnp.dot(x.astype(jnp.bfloat16), w1.astype(jnp.bfloat16),
                preferred_element_type=jnp.float32) + b1[None, :], 0.0)
    ref_bf16 = jnp.sum(h_ref * w2.reshape(1, -1), axis=-1, keepdims=True) + b2
    assert jnp.allclose(out, ref_bf16, atol=1e-3, rtol=1e-3)

    # Loose sanity check vs. pure-f32 math.
    ref_f32 = jnp.maximum(x @ w1 + b1[None, :], 0.0) @ w2 + b2
    assert jnp.allclose(out, ref_f32, atol=5e-2, rtol=5e-2)

    print("KERNEL_OK")
</pallas_src>

<mosaic_0001>
module attributes {stable_mosaic.version = 11 : i64} {
  func.func @mlp_kernel(%arg0: i32, %arg1: memref<8x256xbf16, #tpu.memory_space<vmem>>, %arg2: memref<256x128xbf16, #tpu.memory_space<vmem>>, %arg3: memref<1x128xf32, #tpu.memory_space<vmem>>, %arg4: memref<1x128xf32, #tpu.memory_space<vmem>>, %arg5: memref<1x1xf32, #tpu.memory_space<smem>>, %arg6: memref<8x1xf32, #tpu.memory_space<vmem>>) attributes {dimension_semantics = [#tpu.dimension_semantics<parallel>], iteration_bounds = array<i64: 1>, scalar_prefetch = 0 : i64, scratch_operands = 0 : i64, tpu.core_type = #tpu.core_type<tc>, window_params = [{transform_indices = @transform_0, window_bounds = array<i64: 8, 256>}, {pipeline_mode = #tpu.pipeline_mode<synchronous>, transform_indices = @transform_1, window_bounds = array<i64: 256, 128>}, {pipeline_mode = #tpu.pipeline_mode<synchronous>, transform_indices = @transform_2, window_bounds = array<i64: 1, 128>}, {pipeline_mode = #tpu.pipeline_mode<synchronous>, transform_indices = @transform_3, window_bounds = array<i64: 1, 128>}, {transform_indices = @transform_4, window_bounds = array<i64: 1, 1>}, {transform_indices = @transform_5, window_bounds = array<i64: 8, 1>}]} {
    %c0 = arith.constant 0 : index
    %c0_0 = arith.constant 0 : index
    %0 = vector.load %arg1[%c0, %c0_0] : memref<8x256xbf16, #tpu.memory_space<vmem>>, vector<8x256xbf16>
    %c0_1 = arith.constant 0 : index
    %c0_2 = arith.constant 0 : index
    %1 = vector.load %arg2[%c0_1, %c0_2] : memref<256x128xbf16, #tpu.memory_space<vmem>>, vector<256x128xbf16>
    %cst = arith.constant dense<0.000000e+00> : vector<8x128xf32>
    %2 = tpu.matmul %0, %1, %cst {dimension_numbers = #tpu.dot_dimension_numbers<[1], [0], [0], [1], [0, 0, 1, 1], [], []>} : vector<8x256xbf16>, vector<256x128xbf16>, vector<8x128xf32> -> vector<8x128xf32>
    %c0_3 = arith.constant 0 : index
    %c0_4 = arith.constant 0 : index
    %3 = vector.load %arg3[%c0_3, %c0_4] : memref<1x128xf32, #tpu.memory_space<vmem>>, vector<1x128xf32>
    %4 = vector.broadcast %3 : vector<1x128xf32> to vector<8x128xf32>
    %5 = arith.addf %2, %4 : vector<8x128xf32>
    %cst_5 = arith.constant 0.000000e+00 : f32
    %6 = vector.broadcast %cst_5 : f32 to vector<8x128xf32>
    %7 = arith.maximumf %5, %6 : vector<8x128xf32>
    %c0_6 = arith.constant 0 : index
    %c0_7 = arith.constant 0 : index
    %8 = vector.load %arg4[%c0_6, %c0_7] : memref<1x128xf32, #tpu.memory_space<vmem>>, vector<1x128xf32>
    %9 = vector.broadcast %8 : vector<1x128xf32> to vector<8x128xf32>
    %10 = arith.mulf %7, %9 : vector<8x128xf32>
    %cst_8 = arith.constant dense<0.000000e+00> : vector<8xf32>
    %11 = vector.multi_reduction <add>, %10, %cst_8 [1] : vector<8x128xf32> to vector<8xf32>
    %12 = vector.shape_cast %11 : vector<8xf32> to vector<8x1xf32>
    %c0_9 = arith.constant 0 : index
    %c0_10 = arith.constant 0 : index
    %13 = memref.load %arg5[%c0_9, %c0_10] : memref<1x1xf32, #tpu.memory_space<smem>>
    %14 = vector.broadcast %13 : f32 to vector<8x1xf32>
    %15 = arith.addf %12, %14 : vector<8x1xf32>
    %c0_11 = arith.constant 0 : index
    %c0_12 = arith.constant 0 : index
    %16 = vector.load %arg6[%c0_11, %c0_12] : memref<8x1xf32, #tpu.memory_space<vmem>>, vector<8x1xf32>
    tpu.vector_store %arg6[%c0_11, %c0_12], %15 {strides = array<i32>} : memref<8x1xf32, #tpu.memory_space<vmem>>, vector<8x1xf32>,
    return
  }
  func.func @transform_0(%arg0: i32) -> (i32, i32) {
    %c0_i32 = arith.constant 0 : i32
    %c0_i32_0 = arith.constant 0 : i32
    return %arg0, %c0_i32 : i32, i32
  }
  func.func @transform_1(%arg0: i32) -> (i32, i32) {
    %c0_i32 = arith.constant 0 : i32
    %c0_i32_0 = arith.constant 0 : i32
    %c0_i32_1 = arith.constant 0 : i32
    return %c0_i32, %c0_i32_0 : i32, i32
  }
  func.func @transform_2(%arg0: i32) -> (i32, i32) {
    %c0_i32 = arith.constant 0 : i32
    %c0_i32_0 = arith.constant 0 : i32
    %c0_i32_1 = arith.constant 0 : i32
    return %c0_i32, %c0_i32_0 : i32, i32
  }
  func.func @transform_3(%arg0: i32) -> (i32, i32) {
    %c0_i32 = arith.constant 0 : i32
    %c0_i32_0 = arith.constant 0 : i32
    %c0_i32_1 = arith.constant 0 : i32
    return %c0_i32, %c0_i32_0 : i32, i32
  }
  func.func @transform_4(%arg0: i32) -> (i32, i32) {
    %c0_i32 = arith.constant 0 : i32
    %c0_i32_0 = arith.constant 0 : i32
    %c0_i32_1 = arith.constant 0 : i32
    return %c0_i32, %c0_i32_0 : i32, i32
  }
  func.func @transform_5(%arg0: i32) -> (i32, i32) {
    %c0_i32 = arith.constant 0 : i32
    %c0_i32_0 = arith.constant 0 : i32
    return %arg0, %c0_i32 : i32, i32
  }
}

</mosaic_0001>

<bundles_post_ra>
// kernel: mlp_forward.1
= control target key start
LH: loop header
LB: loop body
LE: loop exit
PB: predicated region body
PF: predicated region fallthrough
CT: control target
= control target key end

     0   :  { %vm198_vm0 = vcmask 7168   ;;  %s379_s1 = inlined_call_operand.vmem [shape: bf16[256,128], index: 1, kind: input, shape index: {}]   ;;  %s380_s2 = inlined_call_operand.vmem [shape: f32[1,128], index: 2, kind: input, shape index: {}]   ;;  %s381_s0 = inlined_call_operand.vmem [shape: bf16[8,256], index: 0, kind: input, shape index: {}]   ;;  %s382_s3 = inlined_call_operand.vmem [shape: f32[1,128], index: 3, kind: input, shape index: {}]   ;;  %s383_s4 = inlined_call_operand.<no memory space> [shape: f32[1,1], index: 4, kind: input, shape index: {}]   ;;  %s384_s5 = inlined_call_operand.vmem [shape: f32[8,1], index: 5, kind: output, shape index: {}]  }
   0x1   :  { %v275_v0 = vld [vmem:[%s379_s1 + $0x38] sm:$0xff]  ;;  %v274_v2 = vld [vmem:[%s379_s1 + $0x30] sm:$0xff]  ;;  %v273_v4 = vld [vmem:[%s379_s1 + $0x28] sm:$0xff]  ;;  %v196_v31 = vstv %s383_s4 }
   0x2   :  { %v283_v1 = vld [vmem:[%s379_s1 + $0x78] sm:$0xff]  ;;  %161 = vmatpush.bf16.msra.mxu0 %v275_v0  ;;  %v282_v3 = vld [vmem:[%s379_s1 + $0x70] sm:$0xff]  ;;  %v281_v5 = vld [vmem:[%s379_s1 + $0x68] sm:$0xff] }
   0x3   :  { %174 = vmatpush.bf16.msra.mxu1 %v283_v1  ;;  %v272_v6 = vld [vmem:[%s379_s1 + $0x20] sm:$0xff]  ;;  %v271_v8 = vld [vmem:[%s379_s1 + $0x18] sm:$0xff]  ;;  %v270_v10 = vld [vmem:[%s379_s1 + $0x10] sm:$0xff] }
   0x4   :  { %v280_v7 = vld [vmem:[%s379_s1 + $0x60] sm:$0xff]  ;;  %v279_v9 = vld [vmem:[%s379_s1 + $0x58] sm:$0xff]  ;;  %v278_v11 = vld [vmem:[%s379_s1 + $0x50] sm:$0xff] }
   0x5   :  { %v269_v12 = vld [vmem:[%s379_s1 + $0x8] sm:$0xff]  ;;  %v21_v14 = vld [vmem:[%s381_s0] sm:$0xff] }
   0x6   :  { %162 = vmatpush.bf16.msra.mxu0 %v274_v2  ;;  %v277_v13 = vld [vmem:[%s379_s1 + $0x48] sm:$0xff]  ;;  %v59_v15 = vunpack.c.l.b16 %v21_v14  ;;  %v60_v16 = vunpack.c.h.b16 %v21_v14  ;;  %v268_v17 = vld [vmem:[%s379_s1] sm:$0xff] }
   0x7   :  { %175 = vmatpush.bf16.msra.mxu1 %v282_v3  ;;  %v276_v18 = vld [vmem:[%s379_s1 + $0x40] sm:$0xff] }
   0x8   :  { %v61_v19 = vpack.c.b16 %v59_v15, %v59_v15  ;;  %v62_v20 = vpack.c.b16 %v60_v16, %v60_v16  ;;  %v284_v21 = vld [vmem:[%s380_s2] ss:$0 sm:$0xff] }
   0x9   :  { %v285_v26 = vld [vmem:[%s382_s3] ss:$0 sm:$0xff] }
   0xa   :  { %163 = vmatpush.bf16.msra.mxu0 %v273_v4 }
   0xb   :  { %176 = vmatpush.bf16.msra.mxu1 %v281_v5 }
   0xe   :  { %164 = vmatpush.bf16.msra.mxu0 %v272_v6 }
   0xf   :  { %177 = vmatpush.bf16.msra.mxu1 %v280_v7 }
  0x12   :  { %165 = vmatpush.bf16.msra.mxu0 %v271_v8 }
  0x13   :  { %178 = vmatpush.bf16.msra.mxu1 %v279_v9 }
  0x16   :  { %166 = vmatpush.bf16.msra.mxu0 %v270_v10 }
  0x17   :  { %179 = vmatpush.bf16.msra.mxu1 %v278_v11 }
  0x1a   :  { %167 = vmatpush.bf16.msra.mxu0 %v269_v12 }
  0x1b   :  { %180 = vmatpush.bf16.msra.mxu1 %v277_v13 }
  0x1e   :  { %168 = vmatpush.bf16.msra.mxu0 %v268_v17 }
  0x1f   :  { %181 = vmatpush.bf16.msra.mxu1 %v276_v18 }
  0x21   :  { %169 = vmatmul.bf16.vlgmr.msra.gmra.mxu0 %v61_v19 }
  0x22   :  { %182 = vmatmul.bf16.vlgmr.msra.gmra.mxu1 %v62_v20 }
  0x9e   :  { %v170_v22 = vpop.f32.mrf.mxu0 }
  0x9f   :  { %v183_v23 = vpop.f32.mrf.mxu1  ;;  %v171_v24 = vadd.f32 %v284_v21, %v170_v22 }
  0xa1   :  { %v184_v25 = vadd.f32 %v183_v23, %v171_v24 }
  0xa3   :  { %v187_v27 = vmax.f32 %v184_v25, 0.0 }
  0xa5   :  { %v192_v28 = vmul.f32 %v285_v26, %v187_v27 }
  0xa6   :  { %v172_v29 = vpop.f32.mrf.mxu0 }
  0xa7   :  { %v185_v30 = vpop.f32.mrf.mxu1  ;;  %193 = vadd.xlane.f32.xlu0 %v192_v28 }
 0x11a   :  { %v194_v32 = vpop.xlane.xlu0 %193 }
 0x11b   :  { %v197_v33 = vadd.f32 %v196_v31, %v194_v32 }
 0x11d   :  { %199 = vst.msk [vmem:[%s384_s5] sm:$0xff] %vm198_vm0, %v197_v33 }

</bundles_post_ra>
